<compile_context>
chip_gen: v6e
topology: v6e:2x2x1
jax: 0.10.0
libtpu: 0.0.40
codegen_flags: <defaults>
</compile_context>

<pallas_src>
import functools

import jax
import jax.numpy as jnp
from jax import lax
from jax.experimental import pallas as pl
from jax.experimental.pallas import tpu as pltpu


def _round_up(v, m):
    return ((v + m - 1) // m) * m


def _vmem_capacity_bytes():
    """Physical per-core VMEM (128 MiB v5e/v6e, 64 MiB v7x); safe fallback."""
    try:
        info = pltpu.get_tpu_info()
        cap = getattr(info, "vmem_capacity_bytes", None)
        if cap:
            return int(cap)
    except Exception:
        pass
    return 64 * 1024 * 1024  # conservative default (v7x per-TC)


# ---------------------------------------------------------------------------
# Kernels
# ---------------------------------------------------------------------------
def _adapter_kernel_fullk(x_ref, w_ref, b_ref, o_ref, *, compute_dtype):
    """Fused ReLU -> matmul -> +bias, full-K contraction in one shot.

    Weight stays in PyTorch (N, K) layout; the contraction uses a
    transposed-RHS dot_general which Mosaic feeds straight into the MXU
    (same pattern as jnp.dot(q, k.T) in the reference flash kernel).
    """
    h = jnp.maximum(x_ref[...], 0).astype(compute_dtype)           # (tm, K)
    w = w_ref[...].astype(compute_dtype)                           # (tn, K)
    acc = lax.dot_general(                                          # (tm, tn)
        h, w,
        dimension_numbers=(((1,), (1,)), ((), ())),
        preferred_element_type=jnp.float32,
    )
    o_ref[...] = (acc + b_ref[...]).astype(o_ref.dtype)


def _adapter_kernel_tiledk(x_ref, w_ref, b_ref, o_ref, acc_ref, *,
                           compute_dtype):
    """Same computation with K as a grid axis and an f32 VMEM accumulator."""
    k = pl.program_id(2)

    @pl.when(k == 0)
    def _():
        acc_ref[...] = jnp.zeros_like(acc_ref)

    h = jnp.maximum(x_ref[...], 0).astype(compute_dtype)           # (tm, tk)
    w = w_ref[...].astype(compute_dtype)                           # (tn, tk)
    acc_ref[...] += lax.dot_general(
        h, w,
        dimension_numbers=(((1,), (1,)), ((), ())),
        preferred_element_type=jnp.float32,
    )

    @pl.when(k == pl.num_programs(2) - 1)
    def _():
        o_ref[...] = (acc_ref[...] + b_ref[...]).astype(o_ref.dtype)


# ---------------------------------------------------------------------------
# Wrapper
# ---------------------------------------------------------------------------
@functools.partial(jax.jit, static_argnames=("tile_m", "use_bf16_matmul"))
def adapter_p_forward(x, weight, bias, tile_m=512, use_bf16_matmul=True):
    """Equivalent of Adapter_P.forward.

    x:      (..., input_dim)
    weight: (output_dim, input_dim)   -- PyTorch nn.Linear weight layout
    bias:   (output_dim,)
    returns (..., output_dim), same dtype as x.
    """
    *lead, input_dim = x.shape
    output_dim, k_w = weight.shape
    assert k_w == input_dim, "weight must be (output_dim, input_dim)"

    m = 1
    for d in lead:
        m *= d
    x2d = x.reshape(m, input_dim)

    compute_dtype = jnp.bfloat16 if use_bf16_matmul else x.dtype
    # Cast the (small) weight once in the wrapper: the kernel streams the
    # narrow dtype from HBM and its VMEM-resident block is half the size.
    # x stays in its original dtype and is cast in VMEM inside the kernel.
    w = weight.astype(compute_dtype)
    b = bias.astype(jnp.float32)

    # Lane-dense output: pad N to a multiple of 128 so stores are unmasked.
    n_pad = _round_up(output_dim, 128)
    if n_pad != output_dim:
        w = jnp.pad(w, ((0, n_pad - output_dim), (0, 0)))
        b = jnp.pad(b, ((0, n_pad - output_dim),))
    b2d = b.reshape(1, n_pad)

    x_bytes = jnp.dtype(x.dtype).itemsize
    w_bytes = jnp.dtype(compute_dtype).itemsize
    o_bytes = jnp.dtype(x.dtype).itemsize

    # ---- chip-aware VMEM budget -----------------------------------------
    cap = _vmem_capacity_bytes()
    vmem_limit = min(cap - 8 * 1024 * 1024, (cap * 7) // 8)   # 56 MiB on v7x,
    budget = vmem_limit - 16 * 1024 * 1024                    # 112/96 MiB v5e/v6e

    def ws_bytes(tm_, tn_, tk_, ktiled_):
        # double-buffered x / w / out blocks (+ bias) + optional accumulator
        s = 2 * (tm_ * tk_ * x_bytes + tn_ * tk_ * w_bytes
                 + tm_ * tn_ * o_bytes + tn_ * 4)
        if ktiled_:
            s += tm_ * tn_ * 4
        return s

    # ---- tile selection ---------------------------------------------------
    gran = 16 if compute_dtype == jnp.bfloat16 else 8
    tm = min(_round_up(tile_m, 128), _round_up(m, gran))
    tn = n_pad              # whole weight resident when it fits
    tk = input_dim
    ktiled = False

    # Shrink tm first (keep multiples of 128 for full-height MXU passes).
    while ws_bytes(tm, tn, tk, ktiled) > budget and tm > 128:
        tm = max(128, _round_up(tm // 2, 128))
    # Then shrink tn (lane-dense multiples of 128).
    while ws_bytes(tm, tn, tk, ktiled) > budget and tn > 128:
        tn = max(128, _round_up(tn // 2, 128))
    # Last resort: tile K (needs an f32 accumulator).  Only when K is
    # 128-aligned so every K block is full and no garbage columns can leak
    # into the contraction.
    if ws_bytes(tm, tn, tk, ktiled) > budget and input_dim % 128 == 0:
        ktiled = True
        best = 128
        t = 128
        while t <= input_dim:
            if input_dim % t == 0 and ws_bytes(tm, tn, t, True) <= budget:
                best = t
            t += 128
        tk = best
    # TODO(synk): shapes where even (128,128,128) tiles exceed the budget are
    # left to the compiler's vmem_limit (possible spill); never hit by
    # Adapter_P-sized problems.

    m_tiles = pl.cdiv(m, tm)
    n_tiles = pl.cdiv(n_pad, tn)

    cost_est = pl.CostEstimate(
        flops=2 * m * input_dim * output_dim,
        transcendentals=0,
        bytes_accessed=(m * input_dim * x_bytes
                        + n_pad * input_dim * w_bytes
                        + n_pad * 4
                        + m * n_pad * o_bytes),
    )

    if not ktiled:
        kernel = functools.partial(_adapter_kernel_fullk,
                                   compute_dtype=compute_dtype)
        x_total = m * input_dim * x_bytes
        w_total = n_pad * input_dim * w_bytes
        # Grid order: re-stream whichever operand costs fewer total HBM bytes.
        # With n_tiles == 1 the weight block index is constant -> DMA'd once.
        if n_tiles == 1 or (w_total * m_tiles + x_total
                            <= x_total * n_tiles + w_total):
            grid = (m_tiles, n_tiles)
            in_specs = [
                pl.BlockSpec((tm, input_dim), lambda i, j: (i, 0)),
                pl.BlockSpec((tn, input_dim), lambda i, j: (j, 0)),
                pl.BlockSpec((1, tn), lambda i, j: (0, j)),
            ]
            out_spec = pl.BlockSpec((tm, tn), lambda i, j: (i, j))
        else:
            grid = (n_tiles, m_tiles)
            in_specs = [
                pl.BlockSpec((tm, input_dim), lambda j, i: (i, 0)),
                pl.BlockSpec((tn, input_dim), lambda j, i: (j, 0)),
                pl.BlockSpec((1, tn), lambda j, i: (0, j)),
            ]
            out_spec = pl.BlockSpec((tm, tn), lambda j, i: (i, j))
        scratch = ()
        dim_sems = ("parallel", "parallel")
    else:
        kernel = functools.partial(_adapter_kernel_tiledk,
                                   compute_dtype=compute_dtype)
        k_tiles = input_dim // tk
        grid = (m_tiles, n_tiles, k_tiles)
        in_specs = [
            pl.BlockSpec((tm, tk), lambda i, j, k: (i, k)),
            pl.BlockSpec((tn, tk), lambda i, j, k: (j, k)),
            pl.BlockSpec((1, tn), lambda i, j, k: (0, j)),
        ]
        out_spec = pl.BlockSpec((tm, tn), lambda i, j, k: (i, j))
        scratch = (pltpu.VMEM((tm, tn), jnp.float32),)
        dim_sems = ("parallel", "parallel", "arbitrary")

    out2d = pl.pallas_call(
        kernel,
        out_shape=jax.ShapeDtypeStruct((m, n_pad), x.dtype),
        grid_spec=pltpu.PrefetchScalarGridSpec(
            num_scalar_prefetch=0,
            grid=grid,
            in_specs=in_specs,
            out_specs=out_spec,
            scratch_shapes=scratch,
        ),
        compiler_params=pltpu.CompilerParams(
            dimension_semantics=dim_sems,
            vmem_limit_bytes=vmem_limit,
        ),
        cost_estimate=cost_est,
    )(x2d, w, b2d)

    if n_pad != output_dim:
        out2d = out2d[:, :output_dim]
    return out2d.reshape(*lead, output_dim)


if __name__ == "__main__":
    key = jax.random.PRNGKey(0)
    kx, kw, kb, kx2, kw3, kb3, kx3 = jax.random.split(key, 7)

    # ---- Case 1: module-like shapes scaled down, output_dim % 128 == 0 ----
    input_dim, output_dim = 256, 128
    weight = jax.random.normal(kw, (output_dim, input_dim), jnp.float32) * 0.02
    bias = jax.random.normal(kb, (output_dim,), jnp.float32) * 0.02
    x = jax.random.normal(kx, (2, 8, input_dim), jnp.float32)
    ref = jnp.maximum(x, 0.0) @ weight.T + bias

    out_f32 = jax.block_until_ready(
        adapter_p_forward(x, weight, bias, use_bf16_matmul=False))
    assert out_f32.shape == (2, 8, output_dim)
    assert jnp.allclose(out_f32, ref, atol=1e-2, rtol=1e-2)

    out_bf16 = jax.block_until_ready(adapter_p_forward(x, weight, bias))
    assert out_bf16.shape == (2, 8, output_dim)
    assert jnp.allclose(out_bf16, ref, atol=3e-2, rtol=3e-2)

    # ---- Case 2: ragged flattened batch -> masked partial M block ---------
    x2 = jax.random.normal(kx2, (2, 13, input_dim), jnp.float32)
    ref2 = jnp.maximum(x2, 0.0) @ weight.T + bias
    out2 = jax.block_until_ready(
        adapter_p_forward(x2, weight, bias, use_bf16_matmul=False))
    assert out2.shape == (2, 13, output_dim)
    assert jnp.allclose(out2, ref2, atol=1e-2, rtol=1e-2)

    # ---- Case 3: output_dim not a multiple of 128 -> lane-pad path --------
    out_dim3 = 200
    weight3 = jax.random.normal(kw3, (out_dim3, input_dim), jnp.float32) * 0.02
    bias3 = jax.random.normal(kb3, (out_dim3,), jnp.float32) * 0.02
    x3 = jax.random.normal(kx3, (3, 5, input_dim), jnp.float32)
    ref3 = jnp.maximum(x3, 0.0) @ weight3.T + bias3
    out3 = jax.block_until_ready(
        adapter_p_forward(x3, weight3, bias3, use_bf16_matmul=False))
    assert out3.shape == (3, 5, out_dim3)
    assert jnp.allclose(out3, ref3, atol=1e-2, rtol=1e-2)

    print("KERNEL_OK")
</pallas_src>

<mosaic_0001>
module attributes {stable_mosaic.version = 11 : i64} {
  func.func @_adapter_kernel_fullk(%arg0: i32, %arg1: i32, %arg2: memref<16x256xf32, #tpu.memory_space<vmem>>, %arg3: memref<128x256xf32, #tpu.memory_space<vmem>>, %arg4: memref<1x128xf32, #tpu.memory_space<vmem>>, %arg5: memref<16x128xf32, #tpu.memory_space<vmem>>) attributes {dimension_semantics = [#tpu.dimension_semantics<parallel>, #tpu.dimension_semantics<parallel>], iteration_bounds = array<i64: 1, 1>, scalar_prefetch = 0 : i64, scratch_operands = 0 : i64, tpu.core_type = #tpu.core_type<tc>, window_params = [{transform_indices = @transform_0, window_bounds = array<i64: 16, 256>}, {transform_indices = @transform_1, window_bounds = array<i64: 128, 256>}, {transform_indices = @transform_2, window_bounds = array<i64: 1, 128>}, {transform_indices = @transform_3, window_bounds = array<i64: 16, 128>}]} {
    %c0 = arith.constant 0 : index
    %c0_0 = arith.constant 0 : index
    %0 = vector.load %arg2[%c0, %c0_0] : memref<16x256xf32, #tpu.memory_space<vmem>>, vector<16x256xf32>
    %cst = arith.constant 0.000000e+00 : f32
    %1 = vector.broadcast %cst : f32 to vector<16x256xf32>
    %2 = arith.maximumf %0, %1 : vector<16x256xf32>
    %c0_1 = arith.constant 0 : index
    %c0_2 = arith.constant 0 : index
    %3 = vector.load %arg3[%c0_1, %c0_2] : memref<128x256xf32, #tpu.memory_space<vmem>>, vector<128x256xf32>
    %cst_3 = arith.constant dense<0.000000e+00> : vector<16x128xf32>
    %4 = tpu.matmul %2, %3, %cst_3 {dimension_numbers = #tpu.dot_dimension_numbers<[1], [1], [0], [0], [0, 0, 1, 0], [], []>} : vector<16x256xf32>, vector<128x256xf32>, vector<16x128xf32> -> vector<16x128xf32>
    %c0_4 = arith.constant 0 : index
    %c0_5 = arith.constant 0 : index
    %5 = vector.load %arg4[%c0_4, %c0_5] : memref<1x128xf32, #tpu.memory_space<vmem>>, vector<1x128xf32>
    %6 = vector.broadcast %5 : vector<1x128xf32> to vector<16x128xf32>
    %7 = arith.addf %4, %6 : vector<16x128xf32>
    %c0_6 = arith.constant 0 : index
    %c0_7 = arith.constant 0 : index
    %8 = vector.load %arg5[%c0_6, %c0_7] : memref<16x128xf32, #tpu.memory_space<vmem>>, vector<16x128xf32>
    tpu.vector_store %arg5[%c0_6, %c0_7], %7 {strides = array<i32>} : memref<16x128xf32, #tpu.memory_space<vmem>>, vector<16x128xf32>,
    return
  }
  func.func @transform_0(%arg0: i32, %arg1: i32) -> (i32, i32) {
    %c0_i32 = arith.constant 0 : i32
    %c0_i32_0 = arith.constant 0 : i32
    return %arg0, %c0_i32 : i32, i32
  }
  func.func @transform_1(%arg0: i32, %arg1: i32) -> (i32, i32) {
    %c0_i32 = arith.constant 0 : i32
    %c0_i32_0 = arith.constant 0 : i32
    return %arg1, %c0_i32 : i32, i32
  }
  func.func @transform_2(%arg0: i32, %arg1: i32) -> (i32, i32) {
    %c0_i32 = arith.constant 0 : i32
    %c0_i32_0 = arith.constant 0 : i32
    return %c0_i32, %arg1 : i32, i32
  }
  func.func @transform_3(%arg0: i32, %arg1: i32) -> (i32, i32) {
    %c0_i32 = arith.constant 0 : i32
    return %arg0, %arg1 : i32, i32
  }
}

</mosaic_0001>

<bundles_post_ra>
// kernel: adapter_p_forward.1
= control target key start
LH: loop header
LB: loop body
LE: loop exit
PB: predicated region body
PF: predicated region fallthrough
CT: control target
= control target key end

     0   :  { %8 = vsyncpa [#allocation3], 0  ;;  %s330_s0 = inlined_call_operand.hbm [shape: f32[16,256], index: 0, kind: input, shape index: {}]   ;;  %s331_s1 = inlined_call_operand.hbm [shape: f32[128,256], index: 1, kind: input, shape index: {}]   ;;  %s332_s2 = inlined_call_operand.vmem [shape: f32[1,128], index: 2, kind: input, shape index: {}]   ;;  %s333_s3 = inlined_call_operand.hbm [shape: f32[16,128], index: 3, kind: output, shape index: {}]  }
   0x1   :  { %9 = vsyncpa [#allocation6], 0 }
   0x2   :  { %10 = vsyncpa [#allocation4], 0  ;;  %s291_s12 = smov [#allocation2]  }
   0x3   :  { %s16_s13 = sshll.u32 %s291_s12, 4  ;;  %s17_s13 = int_to_ptr.vmem [resolvable:$true] %s16_s13 }
   0x4   :  { %s233_s14 = scalar_lea.vmem %s17_s13, 512  ;;  %p238_p1 = scmp.lt.s32.totalorder %s17_s13, %s17_s13 }
   0x5   :  { %p234_p0 = scmp.ne.s32.totalorder %s17_s13, %s233_s14  ;;  %p239_p2 = scmp.lt.s32.totalorder %s233_s14, %s233_s14 }
   0x7   :  { %p240_p3 = por %p239_p2, %p238_p1 }
   0x9   :  { %p241_p4 = pnand %p240_p3, %p234_p0 }
   0xb   :  { %244 = shalt.err (!%p241_p4)
}
   0xc   :  { %s292_s15 = smov 256   ;;  %s293_s16 = smov 16  }
   0xd   :  { %22 = dma.hbm_to_vmem [thread:$0]  %s330_s0, 512, %s17_s13, [#allocation3], %s292_s15, %s292_s15, %s293_s16  }
   0xe   :  { %s294_s19 = smov [#allocation5]  }
   0xf   :  { %s28_s20 = sshll.u32 %s294_s19, 4  ;;  %s29_s20 = int_to_ptr.vmem [resolvable:$true] %s28_s20 }
  0x10   :  { %s253_s21 = scalar_lea.vmem %s29_s20, 4096  ;;  %p258_p6 = scmp.lt.s32.totalorder %s29_s20, %s29_s20 }
  0x11   :  { %p254_p5 = scmp.ne.s32.totalorder %s29_s20, %s253_s21  ;;  %p259_p7 = scmp.lt.s32.totalorder %s253_s21, %s253_s21 }
  0x13   :  { %p260_p8 = por %p259_p7, %p258_p6 }
  0x15   :  { %p261_p9 = pnand %p260_p8, %p254_p5 }
  0x17   :  { %264 = shalt.err (!%p261_p9)
}
  0x18   :  { %34 = dma.hbm_to_vmem [thread:$0]  %s331_s1, 4096, %s29_s20, [#allocation6], %s292_s15, %s292_s15, %s293_s16  }
  0x19   :  { %285 = dma.done.wait [#allocation3], 512  }
  0x1a   :  { %286 = vsyncadd [#allocation3], 4294966784 }
  0x1b   :  { %287 = dma.done.wait [#allocation6], 4096  }
  0x1c   :  { %288 = vsyncadd [#allocation6], 4294963200  ;;  %v82_v0 = vld [vmem:[#allocation5 + $0xf8] sm:$0xff]  ;;  %v81_v1 = vld [vmem:[#allocation5 + $0xf0] sm:$0xff]  ;;  %s295_s0 = smov [#allocation7]  }
  0x1d   :  { %v80_v2 = vld [vmem:[#allocation5 + $0xe8] sm:$0xff]  ;;  %90 = vmatprep.subr.mxu0 %v82_v0  ;;  %186 = vmatprep.subr.mxu1 %v82_v0  ;;  %v79_v3 = vld [vmem:[#allocation5 + $0xe0] sm:$0xff]  ;;  %v78_v4 = vld [vmem:[#allocation5 + $0xd8] sm:$0xff]  ;;  %s172_s1 = sshll.u32 %s295_s0, 4  ;;  %s173_s1 = int_to_ptr.vmem [resolvable:$true] %s172_s1 }
  0x1e   :  { %91 = vmatpush1.xpose.msra.mxu0 %v81_v1  ;;  %202 = vmatpush1.xpose.msra.mxu1 %v81_v1  ;;  %v77_v5 = vld [vmem:[#allocation5 + $0xd0] sm:$0xff]  ;;  %v76_v6 = vld [vmem:[#allocation5 + $0xc8] sm:$0xff]  ;;  %v75_v8 = vld [vmem:[#allocation5 + $0xc0] sm:$0xff]  ;;  %s265_s26 = scalar_lea.vmem %s173_s1, 256  ;;  %p270_p11 = scmp.lt.s32.totalorder %s173_s1, %s173_s1 }
  0x1f   :  { %92 = vmatprep.subr.mxu0 %v80_v2  ;;  %187 = vmatprep.subr.mxu1 %v80_v2  ;;  %v44_v7 = vld [vmem:[#allocation2 + $0x8] sm:$0xff]  ;;  %v46_v10 = vld [vmem:[#allocation2 + $0x18] sm:$0xff]  ;;  %v73_v13 = vld [vmem:[#allocation5 + $0xb0] sm:$0xff]  ;;  %p266_p10 = scmp.ne.s32.totalorder %s173_s1, %s265_s26  ;;  %p271_p12 = scmp.lt.s32.totalorder %s265_s26, %s265_s26 }
  0x20   :  { %v48_v9 = vmax.f32 %v44_v7, 0.0  ;;  %v74_v11 = vld [vmem:[#allocation5 + $0xb8] sm:$0xff]  ;;  %v50_v12 = vmax.f32 %v46_v10, 0.0  ;;  %v72_v14 = vld [vmem:[#allocation5 + $0xa8] sm:$0xff]  ;;  %v71_v15 = vld [vmem:[#allocation5 + $0xa0] sm:$0xff] }
  0x21   :  { %v70_v16 = vld [vmem:[#allocation5 + $0x98] sm:$0xff]  ;;  %v69_v17 = vld [vmem:[#allocation5 + $0x90] sm:$0xff]  ;;  %v68_v18 = vld [vmem:[#allocation5 + $0x88] sm:$0xff]  ;;  %p272_p13 = por %p271_p12, %p270_p11 }
  0x22   :  { %93 = vmatpush1.xpose.msra.mxu0 %v79_v3  ;;  %203 = vmatpush1.xpose.msra.mxu1 %v79_v3  ;;  %v67_v19 = vld [vmem:[#allocation5 + $0x80] sm:$0xff]  ;;  %v66_v20 = vld [vmem:[#allocation5 + $0x78] sm:$0xff]  ;;  %v65_v21 = vld [vmem:[#allocation5 + $0x70] sm:$0xff] }
  0x23   :  { %94 = vmatprep.subr.mxu0 %v78_v4  ;;  %188 = vmatprep.subr.mxu1 %v78_v4  ;;  %v64_v22 = vld [vmem:[#allocation5 + $0x68] sm:$0xff]  ;;  %v63_v23 = vld [vmem:[#allocation5 + $0x60] sm:$0xff]  ;;  %v62_v24 = vld [vmem:[#allocation5 + $0x58] sm:$0xff]  ;;  %p273_p0 = pnand %p272_p13, %p266_p10 }
  0x24   :  { %154 = vmatprep.mubr.f32.mxu0 %v48_v9  ;;  %159 = vmatprep.mubr.f32.mxu1 %v50_v12  ;;  %v61_v25 = vld [vmem:[#allocation5 + $0x50] sm:$0xff]  ;;  %v60_v26 = vld [vmem:[#allocation5 + $0x48] sm:$0xff]  ;;  %v59_v27 = vld [vmem:[#allocation5 + $0x40] sm:$0xff] }
  0x25   :  { %v58_v28 = vld [vmem:[#allocation5 + $0x38] sm:$0xff]  ;;  %v57_v29 = vld [vmem:[#allocation5 + $0x30] sm:$0xff]  ;;  %v56_v30 = vld [vmem:[#allocation5 + $0x28] sm:$0xff] }
  0x26   :  { %95 = vmatpush1.xpose.msra.mxu0 %v77_v5  ;;  %204 = vmatpush1.xpose.msra.mxu1 %v77_v5  ;;  %v55_v31 = vld [vmem:[#allocation5 + $0x20] sm:$0xff]  ;;  %v54_v32 = vld [vmem:[#allocation5 + $0x18] sm:$0xff]  ;;  %v53_v33 = vld [vmem:[#allocation5 + $0x10] sm:$0xff] }
  0x27   :  { %96 = vmatprep.subr.mxu0 %v76_v6  ;;  %189 = vmatprep.subr.mxu1 %v76_v6  ;;  %v52_v34 = vld [vmem:[#allocation5 + $0x8] sm:$0xff]  ;;  %v43_v35 = vld [vmem:[#allocation2] sm:$0xff]  ;;  %v45_v36 = vld [vmem:[#allocation2 + $0x10] sm:$0xff] }
  0x28   :  { %v51_v37 = vld [vmem:[#allocation5] sm:$0xff]  ;;  %v47_v38 = vmax.f32 %v43_v35, 0.0  ;;  %v49_v39 = vmax.f32 %v45_v36, 0.0 }
  0x29   :  { %v185_v40 = vld [vmem:[%s332_s2] ss:$0 sm:$0xff] }
  0x2a   :  { %97 = vmatpush1.xpose.msra.mxu0 %v75_v8  ;;  %205 = vmatpush1.xpose.msra.mxu1 %v75_v8 }
  0x2b   :  { %98 = vmatprep.subr.mxu0 %v74_v11  ;;  %190 = vmatprep.subr.mxu1 %v74_v11 }
  0x2e   :  { %99 = vmatpush1.xpose.msra.mxu0 %v73_v13  ;;  %206 = vmatpush1.xpose.msra.mxu1 %v73_v13 }
  0x2f   :  { %100 = vmatprep.subr.mxu0 %v72_v14  ;;  %191 = vmatprep.subr.mxu1 %v72_v14 }
  0x32   :  { %101 = vmatpush1.xpose.msra.mxu0 %v71_v15  ;;  %207 = vmatpush1.xpose.msra.mxu1 %v71_v15 }
  0x33   :  { %102 = vmatprep.subr.mxu0 %v70_v16  ;;  %192 = vmatprep.subr.mxu1 %v70_v16 }
  0x36   :  { %103 = vmatpush1.xpose.msra.mxu0 %v69_v17  ;;  %208 = vmatpush1.xpose.msra.mxu1 %v69_v17 }
  0x37   :  { %104 = vmatprep.subr.mxu0 %v68_v18  ;;  %193 = vmatprep.subr.mxu1 %v68_v18 }
  0x3a   :  { %105 = vmatpush1.xpose.msra.mxu0 %v67_v19  ;;  %209 = vmatpush1.xpose.msra.mxu1 %v67_v19 }
  0x3b   :  { %106 = vmatprep.subr.mxu0 %v66_v20  ;;  %194 = vmatprep.subr.mxu1 %v66_v20 }
  0x3e   :  { %107 = vmatpush1.xpose.msra.mxu0 %v65_v21  ;;  %210 = vmatpush1.xpose.msra.mxu1 %v65_v21 }
  0x3f   :  { %108 = vmatprep.subr.mxu0 %v64_v22  ;;  %195 = vmatprep.subr.mxu1 %v64_v22 }
  0x42   :  { %109 = vmatpush1.xpose.msra.mxu0 %v63_v23  ;;  %211 = vmatpush1.xpose.msra.mxu1 %v63_v23 }
  0x43   :  { %110 = vmatprep.subr.mxu0 %v62_v24  ;;  %196 = vmatprep.subr.mxu1 %v62_v24 }
  0x46   :  { %111 = vmatpush1.xpose.msra.mxu0 %v61_v25  ;;  %212 = vmatpush1.xpose.msra.mxu1 %v61_v25 }
  0x47   :  { %112 = vmatprep.subr.mxu0 %v60_v26  ;;  %197 = vmatprep.subr.mxu1 %v60_v26 }
  0x4a   :  { %113 = vmatpush1.xpose.msra.mxu0 %v59_v27  ;;  %213 = vmatpush1.xpose.msra.mxu1 %v59_v27 }
  0x4b   :  { %114 = vmatprep.subr.mxu0 %v58_v28  ;;  %198 = vmatprep.subr.mxu1 %v58_v28 }
  0x4e   :  { %115 = vmatpush1.xpose.msra.mxu0 %v57_v29  ;;  %214 = vmatpush1.xpose.msra.mxu1 %v57_v29 }
  0x4f   :  { %116 = vmatprep.subr.mxu0 %v56_v30  ;;  %199 = vmatprep.subr.mxu1 %v56_v30 }
  0x52   :  { %117 = vmatpush1.xpose.msra.mxu0 %v55_v31  ;;  %215 = vmatpush1.xpose.msra.mxu1 %v55_v31 }
  0x53   :  { %118 = vmatprep.subr.mxu0 %v54_v32  ;;  %200 = vmatprep.subr.mxu1 %v54_v32 }
  0x56   :  { %119 = vmatpush1.xpose.msra.mxu0 %v53_v33  ;;  %216 = vmatpush1.xpose.msra.mxu1 %v53_v33 }
  0x57   :  { %120 = vmatprep.subr.mxu0 %v52_v34  ;;  %201 = vmatprep.subr.mxu1 %v52_v34 }
  0x5a   :  { %121 = vmatpush1.xpose.msra.mxu0 %v51_v37  ;;  %217 = vmatpush1.xpose.msra.mxu1 %v51_v37 }
  0x5d   :  { %155 = vmatmul.mubr.f32.vlgmr.msra.gmra.mxu0 %v47_v38  ;;  %160 = vmatmul.mubr.f32.vlgmr.msra.gmra.mxu1 %v49_v39 }
 0x11d   :  { %v156_v41 = vpop.f32.mrf.mxu0  ;;  %v161_v42 = vpop.f32.mrf.mxu1 }
 0x11e   :  { %v157_v43 = vadd.f32 %v185_v40, %v156_v41  ;;  %v162_v44 = vadd.f32 %v185_v40, %v161_v42 }
 0x11f   :  { %v158_v45 = vpop.f32.mrf.mxu0  ;;  %v163_v46 = vpop.f32.mrf.mxu1 }
 0x120   :  { %165 = vst [vmem:[#allocation7] sm:$0xff] %v157_v43  ;;  %166 = vst [vmem:[#allocation7 + $0x8] sm:$0xff] %v162_v44 }
 0x121   :  { %276 = shalt.err (!%p273_p0)
}
 0x122   :  { %s296_s27 = smov 128   ;;  %s297_s28 = smov 8  }
 0x123   :  { %178 = dma.vmem_to_hbm [thread:$0]  %s173_s1, 256, %s333_s3, [#allocation4], %s296_s27, %s296_s27, %s297_s28  }
 0x124   :  { %289 = dma.done.wait [#allocation4], 256  }
 0x125   :  { %290 = vsyncadd [#allocation4], 4294967040 }
 0x126   :  { %182 = vsyncpa [#allocation3], 1 }
 0x127   :  { %183 = vsyncpa [#allocation6], 1 }
 0x128   :  { %184 = vsyncpa [#allocation4], 1 }

</bundles_post_ra>
